<compile_context>
chip_gen: v6e
topology: v6e:2x2x1
jax: 0.10.0
libtpu: 0.0.40
codegen_flags: <defaults>
</compile_context>

<pallas_src>
import functools

import jax
import jax.numpy as jnp
from jax.experimental import pallas as pl
from jax.experimental.pallas import tpu as pltpu


def _round_up(a, b):
    return ((a + b - 1) // b) * b


def _highway_fused_kernel(x_ref, w_ref, b_ref, o_ref, *, num_layers, d):
    """All highway layers applied to one resident row tile.

    x_ref: (bm, Dp)        row tile of activations (storage dtype)
    w_ref: (L, Dp, 2Dp)    per-layer fused [W_t | W_g], input-major (x @ W)
    b_ref: (L, 1, 2Dp)     per-layer fused [b_t | b_g] (f32)
    o_ref: (bm, Dp)
    """
    mxu_dtype = w_ref.dtype
    x0 = x_ref[...]
    hf = x0.astype(jnp.float32)          # elementwise state stays f32
    h = x0.astype(mxu_dtype)             # MXU operand (bf16 fast path)
    for l in range(num_layers):          # small static L -> unrolled
        pre = jnp.dot(h, w_ref[l], preferred_element_type=jnp.float32)
        pre = pre + b_ref[l].astype(jnp.float32)
        t = jnp.maximum(pre[:, :d], 0.0)                # transform (VPU relu)
        z = pre[:, d:]
        g = 0.5 * (jnp.tanh(0.5 * z) + 1.0)             # == sigmoid, 1 EUP op
        hf = hf + g * (t - hf)                          # x + g*(t - x)
        h = hf.astype(mxu_dtype)                        # next layer MXU operand
    o_ref[...] = hf.astype(o_ref.dtype)


@functools.partial(
    jax.jit,
    static_argnames=("block_m", "vmem_limit_bytes", "single_buffer_weights"))
def _highway_pallas(x2d, w_all, b_all, *, block_m, vmem_limit_bytes,
                    single_buffer_weights):
    M, Dp = x2d.shape
    L = w_all.shape[0]
    assert M % block_m == 0
    grid = (M // block_m,)

    kernel = functools.partial(_highway_fused_kernel, num_layers=L, d=Dp)

    cost = pl.CostEstimate(
        flops=2 * L * M * Dp * (2 * Dp),
        transcendentals=L * M * Dp,      # one tanh per gate element
        bytes_accessed=(2 * x2d.size * x2d.dtype.itemsize
                        + w_all.size * w_all.dtype.itemsize
                        + b_all.size * b_all.dtype.itemsize),
    )

    if single_buffer_weights:
        # Constant block index -> no double buffering of the resident
        # weights/biases (halves their VMEM footprint at large D/L).
        w_spec = pl.BlockSpec((L, Dp, 2 * Dp), lambda i: (0, 0, 0),
                              pipeline_mode=pl.Buffered(1))
        b_spec = pl.BlockSpec((L, 1, 2 * Dp), lambda i: (0, 0, 0),
                              pipeline_mode=pl.Buffered(1))
    else:
        w_spec = pl.BlockSpec((L, Dp, 2 * Dp), lambda i: (0, 0, 0))
        b_spec = pl.BlockSpec((L, 1, 2 * Dp), lambda i: (0, 0, 0))

    return pl.pallas_call(
        kernel,
        out_shape=jax.ShapeDtypeStruct((M, Dp), x2d.dtype),
        grid_spec=pltpu.PrefetchScalarGridSpec(
            num_scalar_prefetch=0,
            grid=grid,
            in_specs=[
                pl.BlockSpec((block_m, Dp), lambda i: (i, 0)),   # x row tile
                w_spec,                                          # fused weights
                b_spec,                                          # fused biases
            ],
            out_specs=pl.BlockSpec((block_m, Dp), lambda i: (i, 0)),
        ),
        compiler_params=pltpu.CompilerParams(
            dimension_semantics=("parallel",),
            vmem_limit_bytes=vmem_limit_bytes,
        ),
        cost_estimate=cost,
    )(x2d, w_all, b_all)


def highway_forward(x, params, *, block_m=1024, use_bf16_mxu=True):
    """Full Highway module in one kernel launch.

    x: (B, S, D) with D = 2*embed_size.
    params: list of (w_t, b_t, w_g, b_g) per layer, weights stored input-major
            (i.e. the transpose of the PyTorch weight), biases shaped (1, D).
    use_bf16_mxu: feed bf16 operands to the MXU (f32 accumulation and an f32
            elementwise state are kept).  Set False for strict f32 parity.
    """
    B, S, D = x.shape
    M = B * S
    Dp = _round_up(D, 128)        # lane-align the fused transform/gate split

    w_dtype = jnp.bfloat16 if use_bf16_mxu else x.dtype

    def pad_w(w):
        return jnp.pad(w, ((0, Dp - w.shape[0]), (0, Dp - w.shape[1])))

    def pad_b(b):
        return jnp.pad(b, ((0, 0), (0, Dp - b.shape[1])))

    # Fuse transform/gate per layer -> (Dp, 2Dp) weights and (1, 2Dp) biases,
    # stacked over layers.  Zero padding is exact for highway: padded x
    # columns stay 0 across layers and padded weight rows contribute 0.
    w_all = jnp.stack([
        jnp.concatenate([pad_w(wt), pad_w(wg)], axis=1)
        for (wt, bt, wg, bg) in params]).astype(w_dtype)
    b_all = jnp.stack([
        jnp.concatenate([pad_b(bt), pad_b(bg)], axis=1)
        for (wt, bt, wg, bg) in params]).astype(jnp.float32)

    # Row tile: sublane-pack aligned (16 rows for bf16 operands), bounded so
    # the DMA pipeline stays live, and capped so the grid has >=2 steps when
    # M allows (lets Mosaic shard rows over v7x's two TensorCores).
    align = 16 if (use_bf16_mxu or x.dtype == jnp.bfloat16) else 8
    bm = min(block_m, M)
    if M > align:
        bm = min(bm, _round_up(pl.cdiv(M, 2), align))
    bm = (bm // align) * align
    if bm <= 0 or bm >= M:
        bm = M                    # single full-extent block is always legal

    Mp = _round_up(M, bm)
    x2d = x.reshape(M, D)
    if Dp != D or Mp != M:
        x2d = jnp.pad(x2d, ((0, Mp - M), (0, Dp - D)))

    # Size the VMEM limit from the actual working set: double-buffered in/out
    # row tiles, (single-buffered) resident weights/biases, f32 temporaries.
    io_bytes = 2 * 2 * bm * Dp * x2d.dtype.itemsize
    w_bytes = w_all.size * w_all.dtype.itemsize
    b_bytes = b_all.size * b_all.dtype.itemsize
    tmp_bytes = bm * 2 * Dp * 4 + 2 * bm * Dp * 4
    working = io_bytes + w_bytes + b_bytes + tmp_bytes
    vmem_limit = int(min(max(2 * working + (8 << 20), 32 << 20), 64 << 20))

    try:
        h = _highway_pallas(x2d, w_all, b_all, block_m=bm,
                            vmem_limit_bytes=vmem_limit,
                            single_buffer_weights=True)
    except Exception:
        # Fallback for jax versions without BlockSpec(pipeline_mode=...).
        h = _highway_pallas(x2d, w_all, b_all, block_m=bm,
                            vmem_limit_bytes=vmem_limit,
                            single_buffer_weights=False)

    return h[:M, :D].reshape(B, S, D)


def init_highway_params(key, num_layers, embed_size, dtype=jnp.float32):
    """Deterministic init mimicking nn.Linear(2E, 2E) (uniform +-1/sqrt(fan_in))."""
    D = 2 * embed_size
    bound = 1.0 / (D ** 0.5)
    params = []
    for _ in range(num_layers):
        key, k1, k2, k3, k4 = jax.random.split(key, 5)
        # stored as (D_in, D_out) == W.T of the PyTorch weight
        w_t = jax.random.uniform(k1, (D, D), dtype, -bound, bound)
        b_t = jax.random.uniform(k2, (1, D), dtype, -bound, bound)
        w_g = jax.random.uniform(k3, (D, D), dtype, -bound, bound)
        b_g = jax.random.uniform(k4, (1, D), dtype, -bound, bound)
        params.append((w_t, b_t, w_g, b_g))
    return params


def highway_reference(x, params):
    """Pure-JAX reference matching the PyTorch forward (f32)."""
    B, S, D = x.shape
    h = x.reshape(B * S, D)
    for (w_t, b_t, w_g, b_g) in params:
        t = jax.nn.relu(h @ w_t + b_t)
        g = jax.nn.sigmoid(h @ w_g + b_g)
        h = h * (1.0 - g) + g * t
    return h.reshape(B, S, D)


if __name__ == "__main__":
    num_layers = 2
    embed_size = 64          # -> D = 128 (lane-aligned)
    B, S = 2, 8              # M = 16 rows
    D = 2 * embed_size

    key = jax.random.PRNGKey(0)
    key, kx = jax.random.split(key)
    x = jax.random.normal(kx, (B, S, D), dtype=jnp.float32)

    params = init_highway_params(key, num_layers, embed_size)
    ref = highway_reference(x, params)

    # Strict f32 path: matches the PyTorch forward to tight tolerance.
    out_f32 = jax.block_until_ready(highway_forward(x, params, use_bf16_mxu=False))
    assert out_f32.shape == (B, S, D)
    assert jnp.allclose(out_f32, ref, atol=1e-5, rtol=1e-5), "f32 mismatch vs reference"

    # Fast path: bf16 MXU operands, f32 accumulation / elementwise state.
    out_bf16 = jax.block_until_ready(highway_forward(x, params, use_bf16_mxu=True))
    assert out_bf16.shape == (B, S, D)
    assert jnp.allclose(out_bf16, ref, atol=8e-2, rtol=8e-2), "bf16 mismatch vs reference"

    print("KERNEL_OK")
</pallas_src>

<mosaic_0001>
module attributes {stable_mosaic.version = 11 : i64} {
  func.func @_highway_fused_kernel(%arg0: i32, %arg1: memref<8x128xf32, #tpu.memory_space<vmem>>, %arg2: memref<2x128x256xf32, #tpu.memory_space<vmem>>, %arg3: memref<2x1x256xf32, #tpu.memory_space<vmem>>, %arg4: memref<8x128xf32, #tpu.memory_space<vmem>>) attributes {dimension_semantics = [#tpu.dimension_semantics<parallel>], iteration_bounds = array<i64: 2>, scalar_prefetch = 0 : i64, scratch_operands = 0 : i64, tpu.core_type = #tpu.core_type<tc>, window_params = [{transform_indices = @transform_0, window_bounds = array<i64: 8, 128>}, {pipeline_mode = #tpu.pipeline_mode<synchronous>, transform_indices = @transform_1, window_bounds = array<i64: 2, 128, 256>}, {pipeline_mode = #tpu.pipeline_mode<synchronous>, transform_indices = @transform_2, window_bounds = array<i64: 2, 1, 256>}, {transform_indices = @transform_3, window_bounds = array<i64: 8, 128>}]} {
    %c0 = arith.constant 0 : index
    %c0_0 = arith.constant 0 : index
    %0 = vector.load %arg1[%c0, %c0_0] : memref<8x128xf32, #tpu.memory_space<vmem>>, vector<8x128xf32>
    %c0_1 = arith.constant 0 : index
    %c0_2 = arith.constant 0 : index
    %c0_3 = arith.constant 0 : index
    %1 = vector.load %arg2[%c0_1, %c0_2, %c0_3] : memref<2x128x256xf32, #tpu.memory_space<vmem>>, vector<1x128x256xf32>
    %2 = vector.shape_cast %1 : vector<1x128x256xf32> to vector<128x256xf32>
    %cst = arith.constant dense<0.000000e+00> : vector<8x256xf32>
    %3 = tpu.matmul %0, %2, %cst {dimension_numbers = #tpu.dot_dimension_numbers<[1], [0], [0], [1], [0, 0, 1, 1], [], []>} : vector<8x128xf32>, vector<128x256xf32>, vector<8x256xf32> -> vector<8x256xf32>
    %c0_4 = arith.constant 0 : index
    %c0_5 = arith.constant 0 : index
    %c0_6 = arith.constant 0 : index
    %4 = vector.load %arg3[%c0_4, %c0_5, %c0_6] : memref<2x1x256xf32, #tpu.memory_space<vmem>>, vector<1x1x256xf32>
    %5 = vector.shape_cast %4 : vector<1x1x256xf32> to vector<1x256xf32>
    %6 = vector.broadcast %5 : vector<1x256xf32> to vector<8x256xf32>
    %7 = arith.addf %3, %6 : vector<8x256xf32>
    %8 = vector.extract_strided_slice %7 {offsets = [0, 0], sizes = [8, 128], strides = [1, 1]} : vector<8x256xf32> to vector<8x128xf32>
    %cst_7 = arith.constant 0.000000e+00 : f32
    %9 = vector.broadcast %cst_7 : f32 to vector<8x128xf32>
    %10 = arith.maximumf %8, %9 : vector<8x128xf32>
    %11 = vector.extract_strided_slice %7 {offsets = [0, 128], sizes = [8, 128], strides = [1, 1]} : vector<8x256xf32> to vector<8x128xf32>
    %cst_8 = arith.constant 5.000000e-01 : f32
    %12 = vector.broadcast %cst_8 : f32 to vector<8x128xf32>
    %13 = arith.mulf %12, %11 : vector<8x128xf32>
    %14 = math.tanh %13 : vector<8x128xf32>
    %cst_9 = arith.constant 1.000000e+00 : f32
    %15 = vector.broadcast %cst_9 : f32 to vector<8x128xf32>
    %16 = arith.addf %14, %15 : vector<8x128xf32>
    %cst_10 = arith.constant 5.000000e-01 : f32
    %17 = vector.broadcast %cst_10 : f32 to vector<8x128xf32>
    %18 = arith.mulf %17, %16 : vector<8x128xf32>
    %19 = arith.subf %10, %0 : vector<8x128xf32>
    %20 = arith.mulf %18, %19 : vector<8x128xf32>
    %21 = arith.addf %0, %20 : vector<8x128xf32>
    %c1 = arith.constant 1 : index
    %c0_11 = arith.constant 0 : index
    %c0_12 = arith.constant 0 : index
    %22 = vector.load %arg2[%c1, %c0_11, %c0_12] : memref<2x128x256xf32, #tpu.memory_space<vmem>>, vector<1x128x256xf32>
    %23 = vector.shape_cast %22 : vector<1x128x256xf32> to vector<128x256xf32>
    %cst_13 = arith.constant dense<0.000000e+00> : vector<8x256xf32>
    %24 = tpu.matmul %21, %23, %cst_13 {dimension_numbers = #tpu.dot_dimension_numbers<[1], [0], [0], [1], [0, 0, 1, 1], [], []>} : vector<8x128xf32>, vector<128x256xf32>, vector<8x256xf32> -> vector<8x256xf32>
    %c1_14 = arith.constant 1 : index
    %c0_15 = arith.constant 0 : index
    %c0_16 = arith.constant 0 : index
    %25 = vector.load %arg3[%c1_14, %c0_15, %c0_16] : memref<2x1x256xf32, #tpu.memory_space<vmem>>, vector<1x1x256xf32>
    %26 = vector.shape_cast %25 : vector<1x1x256xf32> to vector<1x256xf32>
    %27 = vector.broadcast %26 : vector<1x256xf32> to vector<8x256xf32>
    %28 = arith.addf %24, %27 : vector<8x256xf32>
    %29 = vector.extract_strided_slice %28 {offsets = [0, 0], sizes = [8, 128], strides = [1, 1]} : vector<8x256xf32> to vector<8x128xf32>
    %cst_17 = arith.constant 0.000000e+00 : f32
    %30 = vector.broadcast %cst_17 : f32 to vector<8x128xf32>
    %31 = arith.maximumf %29, %30 : vector<8x128xf32>
    %32 = vector.extract_strided_slice %28 {offsets = [0, 128], sizes = [8, 128], strides = [1, 1]} : vector<8x256xf32> to vector<8x128xf32>
    %cst_18 = arith.constant 5.000000e-01 : f32
    %33 = vector.broadcast %cst_18 : f32 to vector<8x128xf32>
    %34 = arith.mulf %33, %32 : vector<8x128xf32>
    %35 = math.tanh %34 : vector<8x128xf32>
    %cst_19 = arith.constant 1.000000e+00 : f32
    %36 = vector.broadcast %cst_19 : f32 to vector<8x128xf32>
    %37 = arith.addf %35, %36 : vector<8x128xf32>
    %cst_20 = arith.constant 5.000000e-01 : f32
    %38 = vector.broadcast %cst_20 : f32 to vector<8x128xf32>
    %39 = arith.mulf %38, %37 : vector<8x128xf32>
    %40 = arith.subf %31, %21 : vector<8x128xf32>
    %41 = arith.mulf %39, %40 : vector<8x128xf32>
    %42 = arith.addf %21, %41 : vector<8x128xf32>
    %c0_21 = arith.constant 0 : index
    %c0_22 = arith.constant 0 : index
    %43 = vector.load %arg4[%c0_21, %c0_22] : memref<8x128xf32, #tpu.memory_space<vmem>>, vector<8x128xf32>
    tpu.vector_store %arg4[%c0_21, %c0_22], %42 {strides = array<i32>} : memref<8x128xf32, #tpu.memory_space<vmem>>, vector<8x128xf32>,
    return
  }
  func.func @transform_0(%arg0: i32) -> (i32, i32) {
    %c0_i32 = arith.constant 0 : i32
    %c0_i32_0 = arith.constant 0 : i32
    return %arg0, %c0_i32 : i32, i32
  }
  func.func @transform_1(%arg0: i32) -> (i32, i32, i32) {
    %c0_i32 = arith.constant 0 : i32
    %c0_i32_0 = arith.constant 0 : i32
    %c0_i32_1 = arith.constant 0 : i32
    %c0_i32_2 = arith.constant 0 : i32
    return %c0_i32, %c0_i32_0, %c0_i32_1 : i32, i32, i32
  }
  func.func @transform_2(%arg0: i32) -> (i32, i32, i32) {
    %c0_i32 = arith.constant 0 : i32
    %c0_i32_0 = arith.constant 0 : i32
    %c0_i32_1 = arith.constant 0 : i32
    %c0_i32_2 = arith.constant 0 : i32
    return %c0_i32, %c0_i32_0, %c0_i32_1 : i32, i32, i32
  }
  func.func @transform_3(%arg0: i32) -> (i32, i32) {
    %c0_i32 = arith.constant 0 : i32
    %c0_i32_0 = arith.constant 0 : i32
    return %arg0, %c0_i32 : i32, i32
  }
}

module attributes {stable_mosaic.version = 11 : i64} {
  func.func @_highway_fused_kernel(%arg0: i32, %arg1: memref<8x128xf32, #tpu.memory_space<vmem>>, %arg2: memref<2x128x256xf32, #tpu.memory_space<vmem>>, %arg3: memref<2x1x256xf32, #tpu.memory_space<vmem>>, %arg4: memref<8x128xf32, #tpu.memory_space<vmem>>) attributes {dimension_semantics = [#tpu.dimension_semantics<parallel>], iteration_bounds = array<i64: 2>, scalar_prefetch = 0 : i64, scratch_operands = 0 : i64, tpu.core_type = #tpu.core_type<tc>, window_params = [{transform_indices = @transform_0, window_bounds = array<i64: 8, 128>}, {pipeline_mode = #tpu.pipeline_mode<synchronous>, transform_indices = @transform_1, window_bounds = array<i64: 2, 128, 256>}, {pipeline_mode = #tpu.pipeline_mode<synchronous>, transform_indices = @transform_2, window_bounds = array<i64: 2, 1, 256>}, {transform_indices = @transform_3, window_bounds = array<i64: 8, 128>}]} {
    %c0 = arith.constant 0 : index
    %c0_0 = arith.constant 0 : index
    %0 = vector.load %arg1[%c0, %c0_0] : memref<8x128xf32, #tpu.memory_space<vmem>>, vector<8x128xf32>
    %c0_1 = arith.constant 0 : index
    %c0_2 = arith.constant 0 : index
    %c0_3 = arith.constant 0 : index
    %1 = vector.load %arg2[%c0_1, %c0_2, %c0_3] : memref<2x128x256xf32, #tpu.memory_space<vmem>>, vector<1x128x256xf32>
    %2 = vector.shape_cast %1 : vector<1x128x256xf32> to vector<128x256xf32>
    %cst = arith.constant dense<0.000000e+00> : vector<8x256xf32>
    %3 = tpu.matmul %0, %2, %cst {dimension_numbers = #tpu.dot_dimension_numbers<[1], [0], [0], [1], [0, 0, 1, 1], [], []>} : vector<8x128xf32>, vector<128x256xf32>, vector<8x256xf32> -> vector<8x256xf32>
    %c0_4 = arith.constant 0 : index
    %c0_5 = arith.constant 0 : index
    %c0_6 = arith.constant 0 : index
    %4 = vector.load %arg3[%c0_4, %c0_5, %c0_6] : memref<2x1x256xf32, #tpu.memory_space<vmem>>, vector<1x1x256xf32>
    %5 = vector.shape_cast %4 : vector<1x1x256xf32> to vector<1x256xf32>
    %6 = vector.broadcast %5 : vector<1x256xf32> to vector<8x256xf32>
    %7 = arith.addf %3, %6 : vector<8x256xf32>
    %8 = vector.extract_strided_slice %7 {offsets = [0, 0], sizes = [8, 128], strides = [1, 1]} : vector<8x256xf32> to vector<8x128xf32>
    %cst_7 = arith.constant 0.000000e+00 : f32
    %9 = vector.broadcast %cst_7 : f32 to vector<8x128xf32>
    %10 = arith.maximumf %8, %9 : vector<8x128xf32>
    %11 = vector.extract_strided_slice %7 {offsets = [0, 128], sizes = [8, 128], strides = [1, 1]} : vector<8x256xf32> to vector<8x128xf32>
    %cst_8 = arith.constant 5.000000e-01 : f32
    %12 = vector.broadcast %cst_8 : f32 to vector<8x128xf32>
    %13 = arith.mulf %12, %11 : vector<8x128xf32>
    %14 = math.tanh %13 : vector<8x128xf32>
    %cst_9 = arith.constant 1.000000e+00 : f32
    %15 = vector.broadcast %cst_9 : f32 to vector<8x128xf32>
    %16 = arith.addf %14, %15 : vector<8x128xf32>
    %cst_10 = arith.constant 5.000000e-01 : f32
    %17 = vector.broadcast %cst_10 : f32 to vector<8x128xf32>
    %18 = arith.mulf %17, %16 : vector<8x128xf32>
    %19 = arith.subf %10, %0 : vector<8x128xf32>
    %20 = arith.mulf %18, %19 : vector<8x128xf32>
    %21 = arith.addf %0, %20 : vector<8x128xf32>
    %c1 = arith.constant 1 : index
    %c0_11 = arith.constant 0 : index
    %c0_12 = arith.constant 0 : index
    %22 = vector.load %arg2[%c1, %c0_11, %c0_12] : memref<2x128x256xf32, #tpu.memory_space<vmem>>, vector<1x128x256xf32>
    %23 = vector.shape_cast %22 : vector<1x128x256xf32> to vector<128x256xf32>
    %cst_13 = arith.constant dense<0.000000e+00> : vector<8x256xf32>
    %24 = tpu.matmul %21, %23, %cst_13 {dimension_numbers = #tpu.dot_dimension_numbers<[1], [0], [0], [1], [0, 0, 1, 1], [], []>} : vector<8x128xf32>, vector<128x256xf32>, vector<8x256xf32> -> vector<8x256xf32>
    %c1_14 = arith.constant 1 : index
    %c0_15 = arith.constant 0 : index
    %c0_16 = arith.constant 0 : index
    %25 = vector.load %arg3[%c1_14, %c0_15, %c0_16] : memref<2x1x256xf32, #tpu.memory_space<vmem>>, vector<1x1x256xf32>
    %26 = vector.shape_cast %25 : vector<1x1x256xf32> to vector<1x256xf32>
    %27 = vector.broadcast %26 : vector<1x256xf32> to vector<8x256xf32>
    %28 = arith.addf %24, %27 : vector<8x256xf32>
    %29 = vector.extract_strided_slice %28 {offsets = [0, 0], sizes = [8, 128], strides = [1, 1]} : vector<8x256xf32> to vector<8x128xf32>
    %cst_17 = arith.constant 0.000000e+00 : f32
    %30 = vector.broadcast %cst_17 : f32 to vector<8x128xf32>
    %31 = arith.maximumf %29, %30 : vector<8x128xf32>
    %32 = vector.extract_strided_slice %28 {offsets = [0, 128], sizes = [8, 128], strides = [1, 1]} : vector<8x256xf32> to vector<8x128xf32>
    %cst_18 = arith.constant 5.000000e-01 : f32
    %33 = vector.broadcast %cst_18 : f32 to vector<8x128xf32>
    %34 = arith.mulf %33, %32 : vector<8x128xf32>
    %35 = math.tanh %34 : vector<8x128xf32>
    %cst_19 = arith.constant 1.000000e+00 : f32
    %36 = vector.broadcast %cst_19 : f32 to vector<8x128xf32>
    %37 = arith.addf %35, %36 : vector<8x128xf32>
    %cst_20 = arith.constant 5.000000e-01 : f32
    %38 = vector.broadcast %cst_20 : f32 to vector<8x128xf32>
    %39 = arith.mulf %38, %37 : vector<8x128xf32>
    %40 = arith.subf %31, %21 : vector<8x128xf32>
    %41 = arith.mulf %39, %40 : vector<8x128xf32>
    %42 = arith.addf %21, %41 : vector<8x128xf32>
    %c0_21 = arith.constant 0 : index
    %c0_22 = arith.constant 0 : index
    %43 = vector.load %arg4[%c0_21, %c0_22] : memref<8x128xf32, #tpu.memory_space<vmem>>, vector<8x128xf32>
    tpu.vector_store %arg4[%c0_21, %c0_22], %42 {strides = array<i32>} : memref<8x128xf32, #tpu.memory_space<vmem>>, vector<8x128xf32>,
    return
  }
  func.func @transform_0(%arg0: i32) -> (i32, i32) {
    %c0_i32 = arith.constant 0 : i32
    %c0_i32_0 = arith.constant 0 : i32
    return %arg0, %c0_i32 : i32, i32
  }
  func.func @transform_1(%arg0: i32) -> (i32, i32, i32) {
    %c0_i32 = arith.constant 0 : i32
    %c0_i32_0 = arith.constant 0 : i32
    %c0_i32_1 = arith.constant 0 : i32
    %c0_i32_2 = arith.constant 0 : i32
    return %c0_i32, %c0_i32_0, %c0_i32_1 : i32, i32, i32
  }
  func.func @transform_2(%arg0: i32) -> (i32, i32, i32) {
    %c0_i32 = arith.constant 0 : i32
    %c0_i32_0 = arith.constant 0 : i32
    %c0_i32_1 = arith.constant 0 : i32
    %c0_i32_2 = arith.constant 0 : i32
    return %c0_i32, %c0_i32_0, %c0_i32_1 : i32, i32, i32
  }
  func.func @transform_3(%arg0: i32) -> (i32, i32) {
    %c0_i32 = arith.constant 0 : i32
    %c0_i32_0 = arith.constant 0 : i32
    return %arg0, %c0_i32 : i32, i32
  }
}

</mosaic_0001>

<bundles_post_ra>
// kernel: _highway_pallas.1
= control target key start
LH: loop header
LB: loop body
LE: loop exit
PB: predicated region body
PF: predicated region fallthrough
CT: control target
= control target key end

     0   :  { %8 = vsyncpa [#allocation3], 0  ;;  %s1016_s0 = inlined_call_operand.hbm [shape: f32[16,128], index: 0, kind: input, shape index: {}]   ;;  %s1017_s1 = inlined_call_operand.hbm [shape: f32[2,128,256], index: 1, kind: input, shape index: {}]   ;;  %s1018_s2 = inlined_call_operand.hbm [shape: f32[2,1,256], index: 2, kind: input, shape index: {}]   ;;  %s1019_s3 = inlined_call_operand.hbm [shape: f32[16,128], index: 3, kind: output, shape index: {}]  }
   0x1   :  { %10 = vsyncpa [#allocation3 + $0x1], 0 }
   0x2   :  { %11 = vsyncpa [#allocation6], 0 }
   0x3   :  { %12 = vsyncpa [#allocation4], 0 }
   0x4   :  { %14 = vsyncpa [#allocation4 + $0x1], 0  ;;  %s839_s12 = smov 0   ;;  %s841_s13 = smov 0  }
   0x5   :  { %s843_s14 = smov 0   ;;  %s845_s15 = smov 0  }
   0x6 LB: > { %s860_s16 = sadd.s32 4294967295, %s808_s15   ;;  %s568_s17 = sadd.s32 4294967294, %s808_s15   ;;  %s808_s15 = sphi %s845_s15, %s1041_s15   ;;  %s804_s14 = sphi %s843_s14, %s1040_s14   ;;  %s800_s13 = sphi %s841_s13, %s1039_s13   ;;  %s796_s12 = sphi %s839_s12, %s1038_s12  }
   0x7   : > { %p40_p0 = scmp.ne.s32.totalorder %s800_s13, %s796_s12  ;;  %p1020_p1 = scmp.eq.s32.totalorder %s860_s16, 0 }
   0x8   : > { %p112_p3 = scmp.eq.s32.totalorder %s568_s17, 1  ;;  %p569_p5 = scmp.ge.s32.totalorder %s808_s15, 1 }
   0x9   : > { %p869_p4 = por %p1020_p1, %p40_p0  ;;  %p119_p7 = scmp.lt.s32.totalorder %s808_s15, 3 }
   0xa   : > { %p874_p6 = por %p112_p3, %p40_p0  ;;  %s810_s21 = smov [#allocation5]  }
   0xb   : > { %s1024_s18 = scalar_select %p869_p4, 1, 0 }
   0xc   : > { %s1025_s19 = scalar_select %p874_p6, 1, 0 }
   0xd   : > { %p879_p8 = pnand %p569_p5, %p119_p7  ;;  %s131_s22 = sshll.u32 %s810_s21, 4  ;;  %s132_s22 = int_to_ptr.vmem [resolvable:$true] %s131_s22 }
   0xe   : > { %s811_s24 = smov [#allocation7]   ;;  %s671_s26 = scalar_lea.vmem %s132_s22, 8192 }
   0xf   : > { %s1026_s20 = scalar_select %p879_p8, 1, 0 }
  0x10   : > { %p596_p9 = pneg %p879_p8  ;;  %s144_s25 = sshll.u32 %s811_s24, 4  ;;  %s145_s25 = int_to_ptr.vmem [resolvable:$true] %s144_s25 }
  0x11   : > { %p672_p13 = scmp.ne.s32.totalorder %s132_s22, %s671_s26  ;;  %p679_p5 = scmp.lt.s32.totalorder %s132_s22, %s132_s22 }
  0x12   : > { %p888_p11 = pnand %p596_p9, %p1020_p1  ;;  %p680_p7 = scmp.lt.s32.totalorder %s671_s26, %s671_s26 }
  0x14   : > { %p662_p12 = pneg %p888_p11  ;;  %p681_p10 = por %p680_p7, %p679_p5 }
  0x16   : > { %p674_p0 = pnand %p672_p13, %p662_p12 }
  0x18   : > { %p675_p3 = pneg %p674_p0 }
  0x1a   : > { %p682_p9 = pnand %p681_p10, %p675_p3 }
  0x1c   : > { %685 = shalt.err (!%p682_p9)
}
  0x1d   : > { %s812_s27 = smov 256   ;;  %s813_s28 = smov 16  }
  0x1e   : > { %599 = dma.hbm_to_vmem [thread:$0]  (!%p888_p11), %s1017_s1, 8192, %s132_s22, [#allocation6], %s812_s27, %s812_s27, %s813_s28  }
  0x1f   : > { %s697_s4 = scalar_lea.vmem %s145_s25, 64  ;;  %p705_p2 = scmp.lt.s32.totalorder %s145_s25, %s145_s25 }
  0x20   : > { %p698_p1 = scmp.ne.s32.totalorder %s145_s25, %s697_s4  ;;  %p706_p6 = scmp.lt.s32.totalorder %s697_s4, %s697_s4 }
  0x22   : > { %p700_p13 = pnand %p698_p1, %p662_p12  ;;  %p707_p5 = por %p706_p6, %p705_p2 }
  0x24   : > { %p701_p0 = pneg %p700_p13 }
  0x26   : > { %p708_p10 = pnand %p707_p5, %p701_p0 }
  0x28   : > { %711 = shalt.err (!%p708_p10)
}
  0x29   : > { %s814_s5 = smov 32   ;;  %s815_s6 = smov 2  }
  0x2a   : > { %602 = dma.hbm_to_vmem [thread:$0]  (!%p888_p11), %s1018_s2, 64, %s145_s25, [#allocation6], %s814_s5, %s814_s5, %s815_s6  }
  0x2b   : > { %s911_s9 = sadd.s32 1, %s808_s15   ;;  %s27_s11 = sadd.s32 1, %s804_s14 }
  0x2c   : > { %s24_s10 = ssub.s32 %s808_s15, %s911_s9  ;;  %p34_p2 = scmp.ne.s32.totalorder %s804_s14, %s800_s13 }
  0x2d   : > { %p25_p1 = scmp.eq.s32.totalorder %s24_s10, 0  ;;  %p35_p6 = scmp.eq.s32.totalorder %s808_s15, 0 }
  0x2e   : > { %p1028_p3 = scmp.eq.s32.totalorder %s860_s16, 1  ;;  %p613_p9 = scmp.lt.s32.totalorder %s808_s15, 2 }
  0x2f   : > { %s920_s17 = scalar_select %p25_p1, %s804_s14, %s27_s11  }
  0x30   : > { %p36_p12 = por %p35_p6, %p34_p2  ;;  %p924_p7 = por %p1028_p3, %p34_p2 }
  0x31   : > { %s158_s22 = sand.u32 1, %s804_s14   ;;  %s574_s24 = sshll.u32 %s808_s15, 7 }
  0x32   : > { %s1029_s21 = scalar_select %p924_p7, 1, 0 }
  0x33   : > { %s573_s23 = sshll.u32 %s158_s22, 3  ;;  %s934_s27 = scalar_lea.hbm %s1016_s0, %s574_s24 }
  0x34   : > { %s162_s28 = scalar_lea.vmem [#allocation2], %s573_s23  ;;  %p936_p11 = pnand %p613_p9, %p36_p12 }
  0x35   : > { %s169_s29 = sshll.u32 %s162_s28, 4  ;;  %s159_s4 = scalar_lea.sflag [#allocation3], %s158_s22  ;;  %s170_s29 = int_to_ptr.vmem [resolvable:$true] %s169_s29 }
  0x36   : > { %s712_s5 = scalar_lea.hbm %s934_s27, 128  ;;  %p714_p0 = pneg %p936_p11 }
  0x37   : > { %p713_p13 = scmp.ne.s32.totalorder %s934_s27, %s712_s5  ;;  %s717_s8 = scalar_lea.hbm %s1016_s0, 256 }
  0x38   : > { %p718_p1 = scmp.lt.s32.totalorder %s934_s27, %s1016_s0  ;;  %p719_p2 = scmp.lt.s32.totalorder %s717_s8, %s712_s5 }
  0x39   : > { %p715_p5 = pnand %p714_p0, %p713_p13 }
  0x3a   : > { %p720_p6 = por %p719_p2, %p718_p1 }
  0x3b   : > { %p716_p10 = pneg %p715_p5 }
  0x3d   : > { %p721_p12 = pnand %p720_p6, %p716_p10 }
  0x3f   : > { %724 = shalt.err (!%p721_p12)
}
  0x40   : > { %s725_s23 = scalar_lea.vmem %s170_s29, 128  ;;  %s816_s22 = smov [#allocation2]  }
  0x41   : > { %p726_p3 = scmp.ne.s32.totalorder %s170_s29, %s725_s23  ;;  %s730_s24 = sshll.u32 %s816_s22, 4  ;;  %s731_s24 = int_to_ptr.vmem [resolvable:$false] %s730_s24 }
  0x42   : > { %s732_s25 = scalar_lea.vmem %s731_s24, 256  ;;  %p733_p13 = scmp.lt.s32.totalorder %s170_s29, %s731_s24 }
  0x43   : > { %p728_p9 = pnand %p726_p3, %p714_p0  ;;  %p734_p5 = scmp.lt.s32.totalorder %s732_s25, %s725_s23 }
  0x45   : > { %p729_p7 = pneg %p728_p9  ;;  %p735_p4 = por %p734_p5, %p733_p13 }
  0x47   : > { %p736_p8 = pnand %p735_p4, %p729_p7 }
  0x49   : > { %739 = shalt.err (!%p736_p8)
}
  0x4a   : > { %606 = dma.hbm_to_vmem [thread:$0]  (!%p936_p11), %s934_s27, 128, %s170_s29, %s159_s4  }
  0x4b   : > { %p1031_p10 = scmp.ne.s32.totalorder %s1026_s20, 0 }
  0x4c   : > { %s957_s26 = sand.u32 (!%p1031_p10), 1, %s800_s13   ;;  %p1032_p4 = scmp.ne.s32.totalorder (!%p1031_p10), %s1024_s18, 0 }
  0x4d   : > { %178 = sbr.rel (%p1031_p10) target bundleno = 575 (0x23f), region = 32  ;;  %s576_s28 = sshll.u32 (!%p1031_p10), %s957_s26, 3 }
  0x4e   : > { %s181_s5 = scalar_lea.sflag (!%p1031_p10), [#allocation3], %s957_s26  ;;  %s963_s6 = scalar_lea.vmem (!%p1031_p10), [#allocation2], %s576_s28 }
  0x52   : > { %783 = dma.done.wait (%p1032_p4), %s181_s5, 128  }
  0x53   : > { %785 = vsyncadd (%p1032_p4), %s181_s5, 4294967168  ;;  %p1033_p8 = scmp.eq.s32.totalorder %s860_s16, 0 }
  0x55   : > { %787 = dma.done.wait (%p1033_p8), [#allocation6], 8256   ;;  %p1034_p7 = pmov %p1033_p8 }
  0x56   : > { %v817_v0 = vmov 0.0   ;;  %v247_v1 = vld [vmem:[#allocation5 + $0xf8] sm:$0xff]  ;;  %v246_v2 = vld [vmem:[#allocation5 + $0xf0] sm:$0xff]  ;;  %v245_v3 = vld [vmem:[#allocation5 + $0xe8] sm:$0xff]  ;;  %s581_s18 = sshll.u32 %s860_s16, 7  ;;  %s214_s20 = scalar_lea.vmem [#allocation8], %s576_s28 }
  0x57   : > { %789 = vsyncadd (%p1034_p7), [#allocation6], 4294959040  ;;  %324 = vmatprep.mubr.f32.mxu0 %v817_v0  ;;  %449 = vmatprep.mubr.f32.mxu1 %v817_v0  ;;  %v244_v4 = vld [vmem:[#allocation5 + $0xe0] sm:$0xff]  ;;  %v243_v5 = vld [vmem:[#allocation5 + $0xd8] sm:$0xff]  ;;  %s479_s27 = sshll.u32 %s214_s20, 4  ;;  %s477_s4 = scalar_lea.hbm %s1019_s3, %s581_s18  ;;  %s480_s27 = int_to_ptr.vmem [resolvable:$true] %s479_s27 }
  0x58   : > { %260 = vmatprep.subr.mxu0 %v247_v1  ;;  %v242_v6 = vld [vmem:[#allocation5 + $0xd0] sm:$0xff]  ;;  %v241_v7 = vld [vmem:[#allocation5 + $0xc8] sm:$0xff]  ;;  %v240_v8 = vld [vmem:[#allocation5 + $0xc0] sm:$0xff]  ;;  %s466_s7 = scalar_lea.sflag [#allocation4], %s957_s26  ;;  %s740_s8 = scalar_lea.vmem %s480_s27, 128 }
  0x59   : > { %261 = vmatpush1.msra.mxu0 %v246_v2  ;;  %v239_v9 = vld [vmem:[#allocation5 + $0xb8] sm:$0xff]  ;;  %v238_v10 = vld [vmem:[#allocation5 + $0xb0] sm:$0xff]  ;;  %v237_v11 = vld [vmem:[#allocation5 + $0xa8] sm:$0xff]  ;;  %v250_v2 = vlaneseq  ;;  %p741_p11 = scmp.ne.s32.totalorder %s480_s27, %s740_s8  ;;  %p1035_p0 = scmp.ne.s32.totalorder %s1029_s21, 0 }
  0x5a   : > { %262 = vmatprep.subr.mxu0 %v245_v3  ;;  %v236_v12 = vld [vmem:[#allocation5 + $0xa0] sm:$0xff]  ;;  %v235_v13 = vld [vmem:[#allocation5 + $0x98] sm:$0xff]  ;;  %v234_v14 = vld [vmem:[#allocation5 + $0x90] sm:$0xff]  ;;  %s818_s10 = smov [#allocation8]  }
  0x5b   : > { %263 = vmatpush1.msra.mxu0 %v244_v4  ;;  %v371_v15 = vld [vmem:[#allocation5 + $0x1f8] sm:$0xff]  ;;  %v370_v16 = vld [vmem:[#allocation5 + $0x1f0] sm:$0xff]  ;;  %v369_v17 = vld [vmem:[#allocation5 + $0x1e8] sm:$0xff]  ;;  %v251_v3 = vshrl.u32 %v250_v2, 7  ;;  %p742_p1 = pnand %p741_p11, %p1035_p0  ;;  %s744_s11 = sshll.u32 %s818_s10, 4  ;;  %s745_s11 = int_to_ptr.vmem [resolvable:$false] %s744_s11 }
  0x5c   : > { %264 = vmatprep.subr.mxu0 %v243_v5  ;;  %v233_v18 = vld [vmem:[#allocation5 + $0x88] sm:$0xff]  ;;  %385 = vmatprep.subr.mxu1 %v371_v15  ;;  %v232_v19 = vld [vmem:[#allocation5 + $0x80] sm:$0xff]  ;;  %v231_v20 = vld [vmem:[#allocation5 + $0x78] sm:$0xff]  ;;  %s746_s16 = scalar_lea.vmem %s745_s11, 256  ;;  %p747_p6 = scmp.lt.s32.totalorder %s480_s27, %s745_s11 }
  0x5d   : > { %265 = vmatpush1.msra.mxu0 %v242_v6  ;;  %386 = vmatpush1.msra.mxu1 %v370_v16  ;;  %v230_v21 = vld [vmem:[#allocation5 + $0x70] sm:$0xff]  ;;  %v229_v22 = vld [vmem:[#allocation5 + $0x68] sm:$0xff]  ;;  %v228_v23 = vld [vmem:[#allocation5 + $0x60] sm:$0xff]  ;;  %v256_v4 = vsub.s32 1, %v251_v3  ;;  %p743_p2 = pneg %p742_p1  ;;  %p748_p12 = scmp.lt.s32.totalorder %s746_s16, %s740_s8 }
  0x5e   : > { %266 = vmatprep.subr.mxu0 %v241_v7  ;;  %387 = vmatprep.subr.mxu1 %v369_v17  ;;  %v227_v24 = vld [vmem:[#allocation5 + $0x58] sm:$0xff]  ;;  %v226_v25 = vld [vmem:[#allocation5 + $0x50] sm:$0xff]  ;;  %v225_v26 = vld [vmem:[#allocation5 + $0x48] sm:$0xff] }
  0x5f   : > { %267 = vmatpush1.msra.mxu0 %v240_v8  ;;  %v224_v27 = vld [vmem:[#allocation5 + $0x40] sm:$0xff]  ;;  %v223_v28 = vld [vmem:[#allocation5 + $0x38] sm:$0xff]  ;;  %v222_v29 = vld [vmem:[#allocation5 + $0x30] sm:$0xff]  ;;  %p749_p3 = por %p748_p12, %p747_p6 }
  0x60   : > { %268 = vmatprep.subr.mxu0 %v239_v9  ;;  %v221_v30 = vld [vmem:[#allocation5 + $0x28] sm:$0xff]  ;;  %v220_v31 = vld [vmem:[#allocation5 + $0x20] sm:$0xff]  ;;  %v219_v32 = vld [vmem:[#allocation5 + $0x18] sm:$0xff] }
  0x61   : > { %269 = vmatpush1.msra.mxu0 %v238_v10  ;;  %v218_v33 = vld [vmem:[#allocation5 + $0x10] sm:$0xff]  ;;  %v217_v34 = vld [vmem:[#allocation5 + $0x8] sm:$0xff]  ;;  %v216_v35 = vld [vmem:[#allocation5] sm:$0xff]  ;;  %p750_p9 = pnand %p749_p3, %p743_p2 }
  0x62   : > { %270 = vmatprep.subr.mxu0 %v237_v11  ;;  %v974_v36 = vld [vmem:[%s963_s6] sm:$0xff]  ;;  %v368_v37 = vld [vmem:[#allocation5 + $0x1e0] sm:$0xff]  ;;  %v365_v40 = vld [vmem:[#allocation5 + $0x1c8] sm:$0xff]  ;;  %v252_v11 = vsub.s32 0, %v251_v3 }
  0x63   : > { %271 = vmatpush1.msra.mxu0 %v236_v12  ;;  %388 = vmatpush1.msra.mxu1 %v368_v37  ;;  %v367_v38 = vld [vmem:[#allocation5 + $0x1d8] sm:$0xff]  ;;  %v366_v39 = vld [vmem:[#allocation5 + $0x1d0] sm:$0xff]  ;;  %v364_v41 = vld [vmem:[#allocation5 + $0x1c0] sm:$0xff] }
  0x64   : > { %272 = vmatprep.subr.mxu0 %v235_v13  ;;  %389 = vmatprep.subr.mxu1 %v367_v38  ;;  %v363_v42 = vld [vmem:[#allocation5 + $0x1b8] sm:$0xff]  ;;  %v362_v43 = vld [vmem:[#allocation5 + $0x1b0] sm:$0xff]  ;;  %v361_v44 = vld [vmem:[#allocation5 + $0x1a8] sm:$0xff] }
  0x65   : > { %273 = vmatpush1.msra.mxu0 %v234_v14  ;;  %390 = vmatpush1.msra.mxu1 %v366_v39  ;;  %v360_v45 = vld [vmem:[#allocation5 + $0x1a0] sm:$0xff]  ;;  %v359_v46 = vld [vmem:[#allocation5 + $0x198] sm:$0xff]  ;;  %v358_v47 = vld [vmem:[#allocation5 + $0x190] sm:$0xff] }
  0x66   : > { %274 = vmatprep.subr.mxu0 %v233_v18  ;;  %391 = vmatprep.subr.mxu1 %v365_v40  ;;  %v357_v48 = vld [vmem:[#allocation5 + $0x188] sm:$0xff]  ;;  %v356_v49 = vld [vmem:[#allocation5 + $0x180] sm:$0xff]  ;;  %v355_v50 = vld [vmem:[#allocation5 + $0x178] sm:$0xff] }
  0x67   : > { %275 = vmatpush1.msra.mxu0 %v232_v19  ;;  %392 = vmatpush1.msra.mxu1 %v364_v41  ;;  %v354_v51 = vld [vmem:[#allocation5 + $0x170] sm:$0xff]  ;;  %v353_v52 = vld [vmem:[#allocation5 + $0x168] sm:$0xff]  ;;  %v352_v53 = vld [vmem:[#allocation5 + $0x160] sm:$0xff] }
  0x68   : > { %276 = vmatprep.subr.mxu0 %v231_v20  ;;  %393 = vmatprep.subr.mxu1 %v363_v42  ;;  %v351_v54 = vld [vmem:[#allocation5 + $0x158] sm:$0xff]  ;;  %v350_v55 = vld [vmem:[#allocation5 + $0x150] sm:$0xff]  ;;  %v349_v56 = vld [vmem:[#allocation5 + $0x148] sm:$0xff] }
  0x69   : > { %277 = vmatpush1.msra.mxu0 %v230_v21  ;;  %394 = vmatpush1.msra.mxu1 %v362_v43  ;;  %v348_v57 = vld [vmem:[#allocation5 + $0x140] sm:$0xff]  ;;  %v347_v58 = vld [vmem:[#allocation5 + $0x138] sm:$0xff]  ;;  %v346_v59 = vld [vmem:[#allocation5 + $0x130] sm:$0xff] }
  0x6a   : > { %278 = vmatprep.subr.mxu0 %v229_v22  ;;  %395 = vmatprep.subr.mxu1 %v361_v44  ;;  %v345_v60 = vld [vmem:[#allocation5 + $0x128] sm:$0xff]  ;;  %v344_v61 = vld [vmem:[#allocation5 + $0x120] sm:$0xff]  ;;  %v343_v62 = vld [vmem:[#allocation5 + $0x118] sm:$0xff] }
  0x6b   : > { %279 = vmatpush1.msra.mxu0 %v228_v23  ;;  %396 = vmatpush1.msra.mxu1 %v360_v45  ;;  %v342_v63 = vld [vmem:[#allocation5 + $0x110] sm:$0xff]  ;;  %v341_v0 = vld [vmem:[#allocation5 + $0x108] sm:$0xff]  ;;  %v340_v1 = vld [vmem:[#allocation5 + $0x100] sm:$0xff] }
  0x6c   : > { %280 = vmatprep.subr.mxu0 %v227_v24  ;;  %397 = vmatprep.subr.mxu1 %v359_v46  ;;  %v248_v5 = vld [vmem:[#allocation7] sm:$0x3]  ;;  %v373_v21 = vld [vmem:[#allocation7 + $0x2] sm:$0x3] }
  0x6d   : > { %281 = vmatpush1.msra.mxu0 %v226_v25  ;;  %398 = vmatpush1.msra.mxu1 %v358_v47  ;;  %v257_v6 = vrot.slane %v248_v5, %v256_v4  ;;  %v253_v12 = vrot.slane %v248_v5, %v252_v11  ;;  %v382_v22 = vrot.slane %v373_v21, %v256_v4 }
  0x6e   : > { %282 = vmatprep.subr.mxu0 %v225_v26  ;;  %399 = vmatprep.subr.mxu1 %v357_v48 }
  0x6f   : > { %283 = vmatpush1.msra.mxu0 %v224_v27  ;;  %400 = vmatpush1.msra.mxu1 %v356_v49  ;;  %v378_v27 = vrot.slane %v373_v21, %v252_v11 }
  0x70   : > { %284 = vmatprep.subr.mxu0 %v223_v28  ;;  %401 = vmatprep.subr.mxu1 %v355_v50 }
  0x71   : > { %285 = vmatpush1.msra.mxu0 %v222_v29  ;;  %402 = vmatpush1.msra.mxu1 %v354_v51 }
  0x72   : > { %286 = vmatprep.subr.mxu0 %v221_v30  ;;  %403 = vmatprep.subr.mxu1 %v353_v52 }
  0x73   : > { %287 = vmatpush1.msra.mxu0 %v220_v31  ;;  %404 = vmatpush1.msra.mxu1 %v352_v53 }
  0x74   : > { %288 = vmatprep.subr.mxu0 %v219_v32  ;;  %405 = vmatprep.subr.mxu1 %v351_v54 }
  0x75   : > { %289 = vmatpush1.msra.mxu0 %v218_v33  ;;  %406 = vmatpush1.msra.mxu1 %v350_v55 }
  0x76   : > { %290 = vmatprep.subr.mxu0 %v217_v34  ;;  %407 = vmatprep.subr.mxu1 %v349_v56 }
  0x77   : > { %291 = vmatpush1.msra.mxu0 %v216_v35  ;;  %408 = vmatpush1.msra.mxu1 %v348_v57 }
  0x78   : > { %325 = vmatmul.mubr.f32.vlgmr.msra.gmra.mxu0 %v974_v36  ;;  %409 = vmatprep.subr.mxu1 %v347_v58 }
  0x79   : > { %410 = vmatpush1.msra.mxu1 %v346_v59 }
  0x7a   : > { %411 = vmatprep.subr.mxu1 %v345_v60 }
  0x7b   : > { %412 = vmatpush1.msra.mxu1 %v344_v61 }
  0x7c   : > { %413 = vmatprep.subr.mxu1 %v343_v62 }
  0x7d   : > { %414 = vmatpush1.msra.mxu1 %v342_v63 }
  0x7e   : > { %415 = vmatprep.subr.mxu1 %v341_v0 }
  0x7f   : > { %416 = vmatpush1.msra.mxu1 %v340_v1 }
 0x138   : > { %v326_v7 = vpop.f32.mrf.mxu0 }
 0x139   : > { %v327_v13 = vadd.f32 %v326_v7, %v253_v12 }
 0x13a   : > { %v328_v8 = vpop.f32.mrf.mxu0 }
 0x13b   : > { %v329_v9 = vadd.f32 %v328_v8, %v257_v6  ;;  %v331_v14 = vmax.f32 %v327_v13, 0.0 }
 0x13d   : > { %v332_v10 = vmul.f32 0.5, %v329_v9  ;;  %v336_v17 = vsub.f32 %v331_v14, %v974_v36 }
 0x13f   : > { %656 = vtanh.f32 %v332_v10 }
 0x14c   : > { %v657_v15 = vpop.eup %656 }
 0x14d   : > { %v334_v16 = vadd.f32 1.0, %v657_v15 }
 0x14f   : > { %v335_v18 = vmul.f32 0.5, %v334_v16 }
 0x151   : > { %v337_v19 = vmul.f32 %v336_v17, %v335_v18 }
 0x153   : > { %v338_v20 = vadd.f32 %v337_v19, %v974_v36 }
 0x155   : > { %450 = vmatmul.mubr.f32.vlgmr.msra.gmra.mxu1 %v338_v20 }
 0x215   : > { %v451_v23 = vpop.f32.mrf.mxu1 }
 0x216   : > { %v452_v28 = vadd.f32 %v451_v23, %v378_v27 }
 0x217   : > { %v453_v24 = vpop.f32.mrf.mxu1 }
 0x218   : > { %v454_v25 = vadd.f32 %v453_v24, %v382_v22  ;;  %v456_v29 = vmax.f32 %v452_v28, 0.0 }
 0x21a   : > { %v457_v26 = vmul.f32 0.5, %v454_v25  ;;  %v461_v32 = vsub.f32 %v456_v29, %v338_v20 }
 0x21c   : > { %658 = vtanh.f32 %v457_v26 }
 0x229   : > { %v659_v30 = vpop.eup %658 }
 0x22a   : > { %v459_v31 = vadd.f32 1.0, %v659_v30 }
 0x22c   : > { %v460_v33 = vmul.f32 0.5, %v459_v31 }
 0x22e   : > { %v462_v34 = vmul.f32 %v461_v32, %v460_v33 }
 0x230   : > { %v463_v35 = vadd.f32 %v462_v34, %v338_v20 }
 0x232   : > { %464 = vst [vmem:[%s214_s20] sm:$0xff] %v463_v35 }
 0x233   : > { %753 = shalt.err (!%p750_p9)
}
 0x234   : > { %s754_s23 = scalar_lea.hbm %s477_s4, 128  ;;  %s758_s25 = scalar_lea.hbm %s1019_s3, 256 }
 0x235   : > { %p755_p13 = scmp.ne.s32.totalorder %s477_s4, %s754_s23  ;;  %p759_p4 = scmp.lt.s32.totalorder %s477_s4, %s1019_s3 }
 0x236   : > { %p760_p8 = scmp.lt.s32.totalorder %s758_s25, %s754_s23 }
 0x237   : > { %p756_p5 = pnand %p755_p13, %p1035_p0 }
 0x238   : > { %p761_p7 = por %p760_p8, %p759_p4 }
 0x239   : > { %p757_p10 = pneg %p756_p5 }
 0x23b   : > { %p762_p11 = pnand %p761_p7, %p757_p10 }
 0x23d   : > { %765 = shalt.err (!%p762_p11)
}
 0x23e   : > { %594 = dma.vmem_to_hbm [thread:$0]  (%p1035_p0), %s480_s27, 128, %s477_s4, %s466_s7  }
 0x23f PF: > { %s491_s5 = sand.u32 1, %s796_s12   ;;  %p1036_p1 = scmp.ne.s32.totalorder %s1025_s19, 0 }
 0x240   : > { %p1037_p2 = scmp.ge.s32.totalorder %s808_s15, 2  ;;  %s492_s6 = scalar_lea.sflag [#allocation4], %s491_s5 }
 0x242   : > { %p608_p6 = pnand %p1037_p2, %p1036_p1 }
 0x244   : > { %p609_p12 = pneg %p608_p6 }
 0x246   : > { %791 = dma.done.wait (%p609_p12), %s492_s6, 128  }
 0x247   : > { %793 = vsyncadd (%p609_p12), %s492_s6, 4294967168  ;;  %p17_p3 = scmp.ge.s32.totalorder %s911_s9, 4   ;;  %s1038_s12 = smov %s800_s13 }
 0x248   : > { %s1039_s13 = smov %s804_s14  ;;  %s1040_s14 = smov %s920_s17 }
 0x249   : > { %s1041_s15 = smov %s911_s9  ;;  %19 = sbr.rel (!%p17_p3) target bundleno = 6 (0x6), region = 87 }
 0x24e   :  { %497 = vsyncpa [#allocation3], 1 }
 0x24f   :  { %499 = vsyncpa [#allocation3 + $0x1], 1 }
 0x250   :  { %500 = vsyncpa [#allocation6], 1 }
 0x251   :  { %501 = vsyncpa [#allocation4], 1 }
 0x252   :  { %503 = vsyncpa [#allocation4 + $0x1], 1 }

// kernel: _highway_pallas.1
= control target key start
LH: loop header
LB: loop body
LE: loop exit
PB: predicated region body
PF: predicated region fallthrough
CT: control target
= control target key end

     0   :  { %8 = vsyncpa [#allocation3], 0  ;;  %s1016_s0 = inlined_call_operand.hbm [shape: f32[16,128], index: 0, kind: input, shape index: {}]   ;;  %s1017_s1 = inlined_call_operand.hbm [shape: f32[2,128,256], index: 1, kind: input, shape index: {}]   ;;  %s1018_s2 = inlined_call_operand.hbm [shape: f32[2,1,256], index: 2, kind: input, shape index: {}]   ;;  %s1019_s3 = inlined_call_operand.hbm [shape: f32[16,128], index: 3, kind: output, shape index: {}]  }
   0x1   :  { %10 = vsyncpa [#allocation3 + $0x1], 0 }
   0x2   :  { %11 = vsyncpa [#allocation6], 0 }
   0x3   :  { %12 = vsyncpa [#allocation4], 0 }
   0x4   :  { %14 = vsyncpa [#allocation4 + $0x1], 0  ;;  %s839_s12 = smov 0   ;;  %s841_s13 = smov 0  }
   0x5   :  { %s843_s14 = smov 0   ;;  %s845_s15 = smov 0  }
   0x6 LB: > { %s860_s16 = sadd.s32 4294967295, %s808_s15   ;;  %s568_s17 = sadd.s32 4294967294, %s808_s15   ;;  %s808_s15 = sphi %s845_s15, %s1041_s15   ;;  %s804_s14 = sphi %s843_s14, %s1040_s14   ;;  %s800_s13 = sphi %s841_s13, %s1039_s13   ;;  %s796_s12 = sphi %s839_s12, %s1038_s12  }
   0x7   : > { %p40_p0 = scmp.ne.s32.totalorder %s800_s13, %s796_s12  ;;  %p1020_p1 = scmp.eq.s32.totalorder %s860_s16, 0 }
   0x8   : > { %p112_p3 = scmp.eq.s32.totalorder %s568_s17, 1  ;;  %p569_p5 = scmp.ge.s32.totalorder %s808_s15, 1 }
   0x9   : > { %p869_p4 = por %p1020_p1, %p40_p0  ;;  %p119_p7 = scmp.lt.s32.totalorder %s808_s15, 3 }
   0xa   : > { %p874_p6 = por %p112_p3, %p40_p0  ;;  %s810_s21 = smov [#allocation5]  }
   0xb   : > { %s1024_s18 = scalar_select %p869_p4, 1, 0 }
   0xc   : > { %s1025_s19 = scalar_select %p874_p6, 1, 0 }
   0xd   : > { %p879_p8 = pnand %p569_p5, %p119_p7  ;;  %s131_s22 = sshll.u32 %s810_s21, 4  ;;  %s132_s22 = int_to_ptr.vmem [resolvable:$true] %s131_s22 }
   0xe   : > { %s811_s24 = smov [#allocation7]   ;;  %s671_s26 = scalar_lea.vmem %s132_s22, 8192 }
   0xf   : > { %s1026_s20 = scalar_select %p879_p8, 1, 0 }
  0x10   : > { %p596_p9 = pneg %p879_p8  ;;  %s144_s25 = sshll.u32 %s811_s24, 4  ;;  %s145_s25 = int_to_ptr.vmem [resolvable:$true] %s144_s25 }
  0x11   : > { %p672_p13 = scmp.ne.s32.totalorder %s132_s22, %s671_s26  ;;  %p679_p5 = scmp.lt.s32.totalorder %s132_s22, %s132_s22 }
  0x12   : > { %p888_p11 = pnand %p596_p9, %p1020_p1  ;;  %p680_p7 = scmp.lt.s32.totalorder %s671_s26, %s671_s26 }
  0x14   : > { %p662_p12 = pneg %p888_p11  ;;  %p681_p10 = por %p680_p7, %p679_p5 }
  0x16   : > { %p674_p0 = pnand %p672_p13, %p662_p12 }
  0x18   : > { %p675_p3 = pneg %p674_p0 }
  0x1a   : > { %p682_p9 = pnand %p681_p10, %p675_p3 }
  0x1c   : > { %685 = shalt.err (!%p682_p9)
}
  0x1d   : > { %s812_s27 = smov 256   ;;  %s813_s28 = smov 16  }
  0x1e   : > { %599 = dma.hbm_to_vmem [thread:$0]  (!%p888_p11), %s1017_s1, 8192, %s132_s22, [#allocation6], %s812_s27, %s812_s27, %s813_s28  }
  0x1f   : > { %s697_s4 = scalar_lea.vmem %s145_s25, 64  ;;  %p705_p2 = scmp.lt.s32.totalorder %s145_s25, %s145_s25 }
  0x20   : > { %p698_p1 = scmp.ne.s32.totalorder %s145_s25, %s697_s4  ;;  %p706_p6 = scmp.lt.s32.totalorder %s697_s4, %s697_s4 }
  0x22   : > { %p700_p13 = pnand %p698_p1, %p662_p12  ;;  %p707_p5 = por %p706_p6, %p705_p2 }
  0x24   : > { %p701_p0 = pneg %p700_p13 }
  0x26   : > { %p708_p10 = pnand %p707_p5, %p701_p0 }
  0x28   : > { %711 = shalt.err (!%p708_p10)
}
  0x29   : > { %s814_s5 = smov 32   ;;  %s815_s6 = smov 2  }
  0x2a   : > { %602 = dma.hbm_to_vmem [thread:$0]  (!%p888_p11), %s1018_s2, 64, %s145_s25, [#allocation6], %s814_s5, %s814_s5, %s815_s6  }
  0x2b   : > { %s911_s9 = sadd.s32 1, %s808_s15   ;;  %s27_s11 = sadd.s32 1, %s804_s14 }
  0x2c   : > { %s24_s10 = ssub.s32 %s808_s15, %s911_s9  ;;  %p34_p2 = scmp.ne.s32.totalorder %s804_s14, %s800_s13 }
  0x2d   : > { %p25_p1 = scmp.eq.s32.totalorder %s24_s10, 0  ;;  %p35_p6 = scmp.eq.s32.totalorder %s808_s15, 0 }
  0x2e   : > { %p1028_p3 = scmp.eq.s32.totalorder %s860_s16, 1  ;;  %p613_p9 = scmp.lt.s32.totalorder %s808_s15, 2 }
  0x2f   : > { %s920_s17 = scalar_select %p25_p1, %s804_s14, %s27_s11  }
  0x30   : > { %p36_p12 = por %p35_p6, %p34_p2  ;;  %p924_p7 = por %p1028_p3, %p34_p2 }
  0x31   : > { %s158_s22 = sand.u32 1, %s804_s14   ;;  %s574_s24 = sshll.u32 %s808_s15, 7 }
  0x32   : > { %s1029_s21 = scalar_select %p924_p7, 1, 0 }
  0x33   : > { %s573_s23 = sshll.u32 %s158_s22, 3  ;;  %s934_s27 = scalar_lea.hbm %s1016_s0, %s574_s24 }
  0x34   : > { %s162_s28 = scalar_lea.vmem [#allocation2], %s573_s23  ;;  %p936_p11 = pnand %p613_p9, %p36_p12 }
  0x35   : > { %s169_s29 = sshll.u32 %s162_s28, 4  ;;  %s159_s4 = scalar_lea.sflag [#allocation3], %s158_s22  ;;  %s170_s29 = int_to_ptr.vmem [resolvable:$true] %s169_s29 }
  0x36   : > { %s712_s5 = scalar_lea.hbm %s934_s27, 128  ;;  %p714_p0 = pneg %p936_p11 }
  0x37   : > { %p713_p13 = scmp.ne.s32.totalorder %s934_s27, %s712_s5  ;;  %s717_s8 = scalar_lea.hbm %s1016_s0, 256 }
  0x38   : > { %p718_p1 = scmp.lt.s32.totalorder %s934_s27, %s1016_s0  ;;  %p719_p2 = scmp.lt.s32.totalorder %s717_s8, %s712_s5 }
  0x39   : > { %p715_p5 = pnand %p714_p0, %p713_p13 }
  0x3a   : > { %p720_p6 = por %p719_p2, %p718_p1 }
  0x3b   : > { %p716_p10 = pneg %p715_p5 }
  0x3d   : > { %p721_p12 = pnand %p720_p6, %p716_p10 }
  0x3f   : > { %724 = shalt.err (!%p721_p12)
}
  0x40   : > { %s725_s23 = scalar_lea.vmem %s170_s29, 128  ;;  %s816_s22 = smov [#allocation2]  }
  0x41   : > { %p726_p3 = scmp.ne.s32.totalorder %s170_s29, %s725_s23  ;;  %s730_s24 = sshll.u32 %s816_s22, 4  ;;  %s731_s24 = int_to_ptr.vmem [resolvable:$false] %s730_s24 }
  0x42   : > { %s732_s25 = scalar_lea.vmem %s731_s24, 256  ;;  %p733_p13 = scmp.lt.s32.totalorder %s170_s29, %s731_s24 }
  0x43   : > { %p728_p9 = pnand %p726_p3, %p714_p0  ;;  %p734_p5 = scmp.lt.s32.totalorder %s732_s25, %s725_s23 }
  0x45   : > { %p729_p7 = pneg %p728_p9  ;;  %p735_p4 = por %p734_p5, %p733_p13 }
  0x47   : > { %p736_p8 = pnand %p735_p4, %p729_p7 }
  0x49   : > { %739 = shalt.err (!%p736_p8)
}
  0x4a   : > { %606 = dma.hbm_to_vmem [thread:$0]  (!%p936_p11), %s934_s27, 128, %s170_s29, %s159_s4  }
  0x4b   : > { %p1031_p10 = scmp.ne.s32.totalorder %s1026_s20, 0 }
  0x4c   : > { %s957_s26 = sand.u32 (!%p1031_p10), 1, %s800_s13   ;;  %p1032_p4 = scmp.ne.s32.totalorder (!%p1031_p10), %s1024_s18, 0 }
  0x4d   : > { %178 = sbr.rel (%p1031_p10) target bundleno = 575 (0x23f), region = 32  ;;  %s576_s28 = sshll.u32 (!%p1031_p10), %s957_s26, 3 }
  0x4e   : > { %s181_s5 = scalar_lea.sflag (!%p1031_p10), [#allocation3], %s957_s26  ;;  %s963_s6 = scalar_lea.vmem (!%p1031_p10), [#allocation2], %s576_s28 }
  0x52   : > { %783 = dma.done.wait (%p1032_p4), %s181_s5, 128  }
  0x53   : > { %785 = vsyncadd (%p1032_p4), %s181_s5, 4294967168  ;;  %p1033_p8 = scmp.eq.s32.totalorder %s860_s16, 0 }
  0x55   : > { %787 = dma.done.wait (%p1033_p8), [#allocation6], 8256   ;;  %p1034_p7 = pmov %p1033_p8 }
  0x56   : > { %v817_v0 = vmov 0.0   ;;  %v247_v1 = vld [vmem:[#allocation5 + $0xf8] sm:$0xff]  ;;  %v246_v2 = vld [vmem:[#allocation5 + $0xf0] sm:$0xff]  ;;  %v245_v3 = vld [vmem:[#allocation5 + $0xe8] sm:$0xff]  ;;  %s581_s18 = sshll.u32 %s860_s16, 7  ;;  %s214_s20 = scalar_lea.vmem [#allocation8], %s576_s28 }
  0x57   : > { %789 = vsyncadd (%p1034_p7), [#allocation6], 4294959040  ;;  %324 = vmatprep.mubr.f32.mxu0 %v817_v0  ;;  %449 = vmatprep.mubr.f32.mxu1 %v817_v0  ;;  %v244_v4 = vld [vmem:[#allocation5 + $0xe0] sm:$0xff]  ;;  %v243_v5 = vld [vmem:[#allocation5 + $0xd8] sm:$0xff]  ;;  %s479_s27 = sshll.u32 %s214_s20, 4  ;;  %s477_s4 = scalar_lea.hbm %s1019_s3, %s581_s18  ;;  %s480_s27 = int_to_ptr.vmem [resolvable:$true] %s479_s27 }
  0x58   : > { %260 = vmatprep.subr.mxu0 %v247_v1  ;;  %v242_v6 = vld [vmem:[#allocation5 + $0xd0] sm:$0xff]  ;;  %v241_v7 = vld [vmem:[#allocation5 + $0xc8] sm:$0xff]  ;;  %v240_v8 = vld [vmem:[#allocation5 + $0xc0] sm:$0xff]  ;;  %s466_s7 = scalar_lea.sflag [#allocation4], %s957_s26  ;;  %s740_s8 = scalar_lea.vmem %s480_s27, 128 }
  0x59   : > { %261 = vmatpush1.msra.mxu0 %v246_v2  ;;  %v239_v9 = vld [vmem:[#allocation5 + $0xb8] sm:$0xff]  ;;  %v238_v10 = vld [vmem:[#allocation5 + $0xb0] sm:$0xff]  ;;  %v237_v11 = vld [vmem:[#allocation5 + $0xa8] sm:$0xff]  ;;  %v250_v2 = vlaneseq  ;;  %p741_p11 = scmp.ne.s32.totalorder %s480_s27, %s740_s8  ;;  %p1035_p0 = scmp.ne.s32.totalorder %s1029_s21, 0 }
  0x5a   : > { %262 = vmatprep.subr.mxu0 %v245_v3  ;;  %v236_v12 = vld [vmem:[#allocation5 + $0xa0] sm:$0xff]  ;;  %v235_v13 = vld [vmem:[#allocation5 + $0x98] sm:$0xff]  ;;  %v234_v14 = vld [vmem:[#allocation5 + $0x90] sm:$0xff]  ;;  %s818_s10 = smov [#allocation8]  }
  0x5b   : > { %263 = vmatpush1.msra.mxu0 %v244_v4  ;;  %v371_v15 = vld [vmem:[#allocation5 + $0x1f8] sm:$0xff]  ;;  %v370_v16 = vld [vmem:[#allocation5 + $0x1f0] sm:$0xff]  ;;  %v369_v17 = vld [vmem:[#allocation5 + $0x1e8] sm:$0xff]  ;;  %v251_v3 = vshrl.u32 %v250_v2, 7  ;;  %p742_p1 = pnand %p741_p11, %p1035_p0  ;;  %s744_s11 = sshll.u32 %s818_s10, 4  ;;  %s745_s11 = int_to_ptr.vmem [resolvable:$false] %s744_s11 }
  0x5c   : > { %264 = vmatprep.subr.mxu0 %v243_v5  ;;  %v233_v18 = vld [vmem:[#allocation5 + $0x88] sm:$0xff]  ;;  %385 = vmatprep.subr.mxu1 %v371_v15  ;;  %v232_v19 = vld [vmem:[#allocation5 + $0x80] sm:$0xff]  ;;  %v231_v20 = vld [vmem:[#allocation5 + $0x78] sm:$0xff]  ;;  %s746_s16 = scalar_lea.vmem %s745_s11, 256  ;;  %p747_p6 = scmp.lt.s32.totalorder %s480_s27, %s745_s11 }
  0x5d   : > { %265 = vmatpush1.msra.mxu0 %v242_v6  ;;  %386 = vmatpush1.msra.mxu1 %v370_v16  ;;  %v230_v21 = vld [vmem:[#allocation5 + $0x70] sm:$0xff]  ;;  %v229_v22 = vld [vmem:[#allocation5 + $0x68] sm:$0xff]  ;;  %v228_v23 = vld [vmem:[#allocation5 + $0x60] sm:$0xff]  ;;  %v256_v4 = vsub.s32 1, %v251_v3  ;;  %p743_p2 = pneg %p742_p1  ;;  %p748_p12 = scmp.lt.s32.totalorder %s746_s16, %s740_s8 }
  0x5e   : > { %266 = vmatprep.subr.mxu0 %v241_v7  ;;  %387 = vmatprep.subr.mxu1 %v369_v17  ;;  %v227_v24 = vld [vmem:[#allocation5 + $0x58] sm:$0xff]  ;;  %v226_v25 = vld [vmem:[#allocation5 + $0x50] sm:$0xff]  ;;  %v225_v26 = vld [vmem:[#allocation5 + $0x48] sm:$0xff] }
  0x5f   : > { %267 = vmatpush1.msra.mxu0 %v240_v8  ;;  %v224_v27 = vld [vmem:[#allocation5 + $0x40] sm:$0xff]  ;;  %v223_v28 = vld [vmem:[#allocation5 + $0x38] sm:$0xff]  ;;  %v222_v29 = vld [vmem:[#allocation5 + $0x30] sm:$0xff]  ;;  %p749_p3 = por %p748_p12, %p747_p6 }
  0x60   : > { %268 = vmatprep.subr.mxu0 %v239_v9  ;;  %v221_v30 = vld [vmem:[#allocation5 + $0x28] sm:$0xff]  ;;  %v220_v31 = vld [vmem:[#allocation5 + $0x20] sm:$0xff]  ;;  %v219_v32 = vld [vmem:[#allocation5 + $0x18] sm:$0xff] }
  0x61   : > { %269 = vmatpush1.msra.mxu0 %v238_v10  ;;  %v218_v33 = vld [vmem:[#allocation5 + $0x10] sm:$0xff]  ;;  %v217_v34 = vld [vmem:[#allocation5 + $0x8] sm:$0xff]  ;;  %v216_v35 = vld [vmem:[#allocation5] sm:$0xff]  ;;  %p750_p9 = pnand %p749_p3, %p743_p2 }
  0x62   : > { %270 = vmatprep.subr.mxu0 %v237_v11  ;;  %v974_v36 = vld [vmem:[%s963_s6] sm:$0xff]  ;;  %v368_v37 = vld [vmem:[#allocation5 + $0x1e0] sm:$0xff]  ;;  %v365_v40 = vld [vmem:[#allocation5 + $0x1c8] sm:$0xff]  ;;  %v252_v11 = vsub.s32 0, %v251_v3 }
  0x63   : > { %271 = vmatpush1.msra.mxu0 %v236_v12  ;;  %388 = vmatpush1.msra.mxu1 %v368_v37  ;;  %v367_v38 = vld [vmem:[#allocation5 + $0x1d8] sm:$0xff]  ;;  %v366_v39 = vld [vmem:[#allocation5 + $0x1d0] sm:$0xff]  ;;  %v364_v41 = vld [vmem:[#allocation5 + $0x1c0] sm:$0xff] }
  0x64   : > { %272 = vmatprep.subr.mxu0 %v235_v13  ;;  %389 = vmatprep.subr.mxu1 %v367_v38  ;;  %v363_v42 = vld [vmem:[#allocation5 + $0x1b8] sm:$0xff]  ;;  %v362_v43 = vld [vmem:[#allocation5 + $0x1b0] sm:$0xff]  ;;  %v361_v44 = vld [vmem:[#allocation5 + $0x1a8] sm:$0xff] }
  0x65   : > { %273 = vmatpush1.msra.mxu0 %v234_v14  ;;  %390 = vmatpush1.msra.mxu1 %v366_v39  ;;  %v360_v45 = vld [vmem:[#allocation5 + $0x1a0] sm:$0xff]  ;;  %v359_v46 = vld [vmem:[#allocation5 + $0x198] sm:$0xff]  ;;  %v358_v47 = vld [vmem:[#allocation5 + $0x190] sm:$0xff] }
  0x66   : > { %274 = vmatprep.subr.mxu0 %v233_v18  ;;  %391 = vmatprep.subr.mxu1 %v365_v40  ;;  %v357_v48 = vld [vmem:[#allocation5 + $0x188] sm:$0xff]  ;;  %v356_v49 = vld [vmem:[#allocation5 + $0x180] sm:$0xff]  ;;  %v355_v50 = vld [vmem:[#allocation5 + $0x178] sm:$0xff] }
  0x67   : > { %275 = vmatpush1.msra.mxu0 %v232_v19  ;;  %392 = vmatpush1.msra.mxu1 %v364_v41  ;;  %v354_v51 = vld [vmem:[#allocation5 + $0x170] sm:$0xff]  ;;  %v353_v52 = vld [vmem:[#allocation5 + $0x168] sm:$0xff]  ;;  %v352_v53 = vld [vmem:[#allocation5 + $0x160] sm:$0xff] }
  0x68   : > { %276 = vmatprep.subr.mxu0 %v231_v20  ;;  %393 = vmatprep.subr.mxu1 %v363_v42  ;;  %v351_v54 = vld [vmem:[#allocation5 + $0x158] sm:$0xff]  ;;  %v350_v55 = vld [vmem:[#allocation5 + $0x150] sm:$0xff]  ;;  %v349_v56 = vld [vmem:[#allocation5 + $0x148] sm:$0xff] }
  0x69   : > { %277 = vmatpush1.msra.mxu0 %v230_v21  ;;  %394 = vmatpush1.msra.mxu1 %v362_v43  ;;  %v348_v57 = vld [vmem:[#allocation5 + $0x140] sm:$0xff]  ;;  %v347_v58 = vld [vmem:[#allocation5 + $0x138] sm:$0xff]  ;;  %v346_v59 = vld [vmem:[#allocation5 + $0x130] sm:$0xff] }
  0x6a   : > { %278 = vmatprep.subr.mxu0 %v229_v22  ;;  %395 = vmatprep.subr.mxu1 %v361_v44  ;;  %v345_v60 = vld [vmem:[#allocation5 + $0x128] sm:$0xff]  ;;  %v344_v61 = vld [vmem:[#allocation5 + $0x120] sm:$0xff]  ;;  %v343_v62 = vld [vmem:[#allocation5 + $0x118] sm:$0xff] }
  0x6b   : > { %279 = vmatpush1.msra.mxu0 %v228_v23  ;;  %396 = vmatpush1.msra.mxu1 %v360_v45  ;;  %v342_v63 = vld [vmem:[#allocation5 + $0x110] sm:$0xff]  ;;  %v341_v0 = vld [vmem:[#allocation5 + $0x108] sm:$0xff]  ;;  %v340_v1 = vld [vmem:[#allocation5 + $0x100] sm:$0xff] }
  0x6c   : > { %280 = vmatprep.subr.mxu0 %v227_v24  ;;  %397 = vmatprep.subr.mxu1 %v359_v46  ;;  %v248_v5 = vld [vmem:[#allocation7] sm:$0x3]  ;;  %v373_v21 = vld [vmem:[#allocation7 + $0x2] sm:$0x3] }
  0x6d   : > { %281 = vmatpush1.msra.mxu0 %v226_v25  ;;  %398 = vmatpush1.msra.mxu1 %v358_v47  ;;  %v257_v6 = vrot.slane %v248_v5, %v256_v4  ;;  %v253_v12 = vrot.slane %v248_v5, %v252_v11  ;;  %v382_v22 = vrot.slane %v373_v21, %v256_v4 }
  0x6e   : > { %282 = vmatprep.subr.mxu0 %v225_v26  ;;  %399 = vmatprep.subr.mxu1 %v357_v48 }
  0x6f   : > { %283 = vmatpush1.msra.mxu0 %v224_v27  ;;  %400 = vmatpush1.msra.mxu1 %v356_v49  ;;  %v378_v27 = vrot.slane %v373_v21, %v252_v11 }
  0x70   : > { %284 = vmatprep.subr.mxu0 %v223_v28  ;;  %401 = vmatprep.subr.mxu1 %v355_v50 }
  0x71   : > { %285 = vmatpush1.msra.mxu0 %v222_v29  ;;  %402 = vmatpush1.msra.mxu1 %v354_v51 }
  0x72   : > { %286 = vmatprep.subr.mxu0 %v221_v30  ;;  %403 = vmatprep.subr.mxu1 %v353_v52 }
  0x73   : > { %287 = vmatpush1.msra.mxu0 %v220_v31  ;;  %404 = vmatpush1.msra.mxu1 %v352_v53 }
  0x74   : > { %288 = vmatprep.subr.mxu0 %v219_v32  ;;  %405 = vmatprep.subr.mxu1 %v351_v54 }
  0x75   : > { %289 = vmatpush1.msra.mxu0 %v218_v33  ;;  %406 = vmatpush1.msra.mxu1 %v350_v55 }
  0x76   : > { %290 = vmatprep.subr.mxu0 %v217_v34  ;;  %407 = vmatprep.subr.mxu1 %v349_v56 }
  0x77   : > { %291 = vmatpush1.msra.mxu0 %v216_v35  ;;  %408 = vmatpush1.msra.mxu1 %v348_v57 }
  0x78   : > { %325 = vmatmul.mubr.f32.vlgmr.msra.gmra.mxu0 %v974_v36  ;;  %409 = vmatprep.subr.mxu1 %v347_v58 }
  0x79   : > { %410 = vmatpush1.msra.mxu1 %v346_v59 }
  0x7a   : > { %411 = vmatprep.subr.mxu1 %v345_v60 }
  0x7b   : > { %412 = vmatpush1.msra.mxu1 %v344_v61 }
  0x7c   : > { %413 = vmatprep.subr.mxu1 %v343_v62 }
  0x7d   : > { %414 = vmatpush1.msra.mxu1 %v342_v63 }
  0x7e   : > { %415 = vmatprep.subr.mxu1 %v341_v0 }
  0x7f   : > { %416 = vmatpush1.msra.mxu1 %v340_v1 }
 0x138   : > { %v326_v7 = vpop.f32.mrf.mxu0 }
 0x139   : > { %v327_v13 = vadd.f32 %v326_v7, %v253_v12 }
 0x13a   : > { %v328_v8 = vpop.f32.mrf.mxu0 }
 0x13b   : > { %v329_v9 = vadd.f32 %v328_v8, %v257_v6  ;;  %v331_v14 = vmax.f32 %v327_v13, 0.0 }
 0x13d   : > { %v332_v10 = vmul.f32 0.5, %v329_v9  ;;  %v336_v17 = vsub.f32 %v331_v14, %v974_v36 }
 0x13f   : > { %656 = vtanh.f32 %v332_v10 }
 0x14c   : > { %v657_v15 = vpop.eup %656 }
 0x14d   : > { %v334_v16 = vadd.f32 1.0, %v657_v15 }
 0x14f   : > { %v335_v18 = vmul.f32 0.5, %v334_v16 }
 0x151   : > { %v337_v19 = vmul.f32 %v336_v17, %v335_v18 }
 0x153   : > { %v338_v20 = vadd.f32 %v337_v19, %v974_v36 }
 0x155   : > { %450 = vmatmul.mubr.f32.vlgmr.msra.gmra.mxu1 %v338_v20 }
 0x215   : > { %v451_v23 = vpop.f32.mrf.mxu1 }
 0x216   : > { %v452_v28 = vadd.f32 %v451_v23, %v378_v27 }
 0x217   : > { %v453_v24 = vpop.f32.mrf.mxu1 }
 0x218   : > { %v454_v25 = vadd.f32 %v453_v24, %v382_v22  ;;  %v456_v29 = vmax.f32 %v452_v28, 0.0 }
 0x21a   : > { %v457_v26 = vmul.f32 0.5, %v454_v25  ;;  %v461_v32 = vsub.f32 %v456_v29, %v338_v20 }
 0x21c   : > { %658 = vtanh.f32 %v457_v26 }
 0x229   : > { %v659_v30 = vpop.eup %658 }
 0x22a   : > { %v459_v31 = vadd.f32 1.0, %v659_v30 }
 0x22c   : > { %v460_v33 = vmul.f32 0.5, %v459_v31 }
 0x22e   : > { %v462_v34 = vmul.f32 %v461_v32, %v460_v33 }
 0x230   : > { %v463_v35 = vadd.f32 %v462_v34, %v338_v20 }
 0x232   : > { %464 = vst [vmem:[%s214_s20] sm:$0xff] %v463_v35 }
 0x233   : > { %753 = shalt.err (!%p750_p9)
}
 0x234   : > { %s754_s23 = scalar_lea.hbm %s477_s4, 128  ;;  %s758_s25 = scalar_lea.hbm %s1019_s3, 256 }
 0x235   : > { %p755_p13 = scmp.ne.s32.totalorder %s477_s4, %s754_s23  ;;  %p759_p4 = scmp.lt.s32.totalorder %s477_s4, %s1019_s3 }
 0x236   : > { %p760_p8 = scmp.lt.s32.totalorder %s758_s25, %s754_s23 }
 0x237   : > { %p756_p5 = pnand %p755_p13, %p1035_p0 }
 0x238   : > { %p761_p7 = por %p760_p8, %p759_p4 }
 0x239   : > { %p757_p10 = pneg %p756_p5 }
 0x23b   : > { %p762_p11 = pnand %p761_p7, %p757_p10 }
 0x23d   : > { %765 = shalt.err (!%p762_p11)
}
 0x23e   : > { %594 = dma.vmem_to_hbm [thread:$0]  (%p1035_p0), %s480_s27, 128, %s477_s4, %s466_s7  }
 0x23f PF: > { %s491_s5 = sand.u32 1, %s796_s12   ;;  %p1036_p1 = scmp.ne.s32.totalorder %s1025_s19, 0 }
 0x240   : > { %p1037_p2 = scmp.ge.s32.totalorder %s808_s15, 2  ;;  %s492_s6 = scalar_lea.sflag [#allocation4], %s491_s5 }
 0x242   : > { %p608_p6 = pnand %p1037_p2, %p1036_p1 }
 0x244   : > { %p609_p12 = pneg %p608_p6 }
 0x246   : > { %791 = dma.done.wait (%p609_p12), %s492_s6, 128  }
 0x247   : > { %793 = vsyncadd (%p609_p12), %s492_s6, 4294967168  ;;  %p17_p3 = scmp.ge.s32.totalorder %s911_s9, 4   ;;  %s1038_s12 = smov %s800_s13 }
 0x248   : > { %s1039_s13 = smov %s804_s14  ;;  %s1040_s14 = smov %s920_s17 }
 0x249   : > { %s1041_s15 = smov %s911_s9  ;;  %19 = sbr.rel (!%p17_p3) target bundleno = 6 (0x6), region = 87 }
 0x24e   :  { %497 = vsyncpa [#allocation3], 1 }
 0x24f   :  { %499 = vsyncpa [#allocation3 + $0x1], 1 }
 0x250   :  { %500 = vsyncpa [#allocation6], 1 }
 0x251   :  { %501 = vsyncpa [#allocation4], 1 }
 0x252   :  { %503 = vsyncpa [#allocation4 + $0x1], 1 }

</bundles_post_ra>
